<compile_context>
chip_gen: v7x
topology: tpu7x:2x2x1
jax: 0.10.0
libtpu: 0.0.40
codegen_flags: <defaults>
</compile_context>

<pallas_src>
import jax
import jax.numpy as jnp
from jax.experimental import pallas as pl
from jax.experimental.pallas import tpu as pltpu


def _mf_compute(uid_ref, iid_ref, wt_ref, ht_ref):
    """Shared gather + multiply for both kernel variants.

    uid_ref / iid_ref : VMEM (1, TB) int32
    wt_ref            : VMEM (K, num_users) f32  (W transposed, full table)
    ht_ref            : VMEM (K, num_items) f32  (H transposed, full table)
    returns Ut, Vt    : (K, TB) f32, batch on lanes
    """
    tb = uid_ref.shape[1]
    nu = wt_ref.shape[1]
    ni = ht_ref.shape[1]

    u_ids = uid_ref[...]  # (1, TB)
    i_ids = iid_ref[...]  # (1, TB)

    # One-hot selection matrices, batch on the lane axis.
    onehot_u = (jax.lax.broadcasted_iota(jnp.int32, (nu, tb), 0) == u_ids
                ).astype(jnp.float32)                       # (num_users, TB)
    onehot_i = (jax.lax.broadcasted_iota(jnp.int32, (ni, tb), 0) == i_ids
                ).astype(jnp.float32)                       # (num_items, TB)

    # MXU gather: exactly one nonzero per output column.
    Ut = jnp.dot(wt_ref[...], onehot_u,
                 preferred_element_type=jnp.float32)        # (K, TB)
    Vt = jnp.dot(ht_ref[...], onehot_i,
                 preferred_element_type=jnp.float32)        # (K, TB)
    return Ut, Vt


def _mf_infer_kernel(uid_ref, iid_ref, wt_ref, ht_ref, out_ref):
    Ut, Vt = _mf_compute(uid_ref, iid_ref, wt_ref, ht_ref)
    # Sublane reduce over K rows (cheap VPU adds); lane-dense (1, TB) store.
    out_ref[...] = jnp.sum(Ut * Vt, axis=0, keepdims=True)


def _mf_train_kernel(uid_ref, iid_ref, wt_ref, ht_ref,
                     out_ref, uemb_ref, vemb_ref):
    Ut, Vt = _mf_compute(uid_ref, iid_ref, wt_ref, ht_ref)
    uemb_ref[...] = Ut
    vemb_ref[...] = Vt
    out_ref[...] = jnp.sum(Ut * Vt, axis=0, keepdims=True)


def mf_forward(x, W, H, *, is_training=False, block_b=512):
    """Pallas equivalent of MF_BaseModel.forward.

    x : (B, 2) int, column 0 = user index, column 1 = item index
    W : (num_users, K) f32, H : (num_items, K) f32
    Returns out (B,)  [inference]  or  (out, U_emb (B,K), V_emb (B,K)) [training].
    """
    B = x.shape[0]
    num_users, K = W.shape
    num_items, K2 = H.shape
    assert K == K2

    # Lane-dense block size: multiple of 128, but don't over-pad tiny batches.
    block_b = max(128, min(block_b, pl.next_power_of_2(B)))
    n_blocks = pl.cdiv(B, block_b)
    B_pad = n_blocks * block_b
    pad = B_pad - B

    # Clamp (no silent OOB VMEM reads) and pad the ragged tail with index 0.
    user_idx = jnp.clip(x[:, 0].astype(jnp.int32), 0, num_users - 1)
    item_idx = jnp.clip(x[:, 1].astype(jnp.int32), 0, num_items - 1)
    user_idx = jnp.pad(user_idx, (0, pad)).reshape(1, B_pad)
    item_idx = jnp.pad(item_idx, (0, pad)).reshape(1, B_pad)

    # Pre-transpose tables so the in-kernel gather is a plain (K,U) @ (U,TB).
    Wt = W.astype(jnp.float32).T   # (K, num_users)
    Ht = H.astype(jnp.float32).T   # (K, num_items)

    idx_spec = pl.BlockSpec((1, block_b), lambda i: (0, i))
    wt_spec = pl.BlockSpec((K, num_users), lambda i: (0, 0))   # resident table
    ht_spec = pl.BlockSpec((K, num_items), lambda i: (0, 0))   # resident table
    out_spec = pl.BlockSpec((1, block_b), lambda i: (0, i))
    emb_spec = pl.BlockSpec((K, block_b), lambda i: (0, i))
    cp = pltpu.CompilerParams(dimension_semantics=("parallel",))

    if is_training:
        out, u_t, v_t = pl.pallas_call(
            _mf_train_kernel,
            out_shape=(
                jax.ShapeDtypeStruct((1, B_pad), jnp.float32),
                jax.ShapeDtypeStruct((K, B_pad), jnp.float32),
                jax.ShapeDtypeStruct((K, B_pad), jnp.float32),
            ),
            grid=(n_blocks,),
            in_specs=[idx_spec, idx_spec, wt_spec, ht_spec],
            out_specs=(out_spec, emb_spec, emb_spec),
            compiler_params=cp,
        )(user_idx, item_idx, Wt, Ht)
        # Wrapper-side layout plumbing back to the PyTorch (B, K) convention.
        return out[0, :B], u_t[:, :B].T, v_t[:, :B].T

    # Inference variant: no embedding writeback at all.
    out = pl.pallas_call(
        _mf_infer_kernel,
        out_shape=jax.ShapeDtypeStruct((1, B_pad), jnp.float32),
        grid=(n_blocks,),
        in_specs=[idx_spec, idx_spec, wt_spec, ht_spec],
        out_specs=out_spec,
        compiler_params=cp,
    )(user_idx, item_idx, Wt, Ht)
    return out[0, :B]


if __name__ == "__main__":
    # Small shapes consistent with MF_BaseModel.__init__
    num_users = 32
    num_items = 48
    embedding_k = 4
    batch = 16

    key = jax.random.PRNGKey(0)
    k_w, k_h, k_u, k_i = jax.random.split(key, 4)

    # bf16-representable table values keep the one-hot MXU gather bit-exact on
    # any TPU matmul precision path, so the reference checks can stay tight.
    W = jax.random.normal(k_w, (num_users, embedding_k), jnp.float32)
    H = jax.random.normal(k_h, (num_items, embedding_k), jnp.float32)
    W = W.astype(jnp.bfloat16).astype(jnp.float32)
    H = H.astype(jnp.bfloat16).astype(jnp.float32)

    user_ids = jax.random.randint(k_u, (batch,), 0, num_users, dtype=jnp.int32)
    item_ids = jax.random.randint(k_i, (batch,), 0, num_items, dtype=jnp.int32)
    x = jnp.stack([user_ids, item_ids], axis=1)

    # Inference path
    out = mf_forward(x, W, H, is_training=False)
    out = jax.block_until_ready(out)
    ref = jnp.sum(W[user_ids] * H[item_ids], axis=1)
    assert out.shape == (batch,)
    assert jnp.allclose(out, ref, atol=1e-5), "inference output mismatch"

    # Training path (out, U_emb, V_emb)
    out_t, u_emb, v_emb = mf_forward(x, W, H, is_training=True)
    jax.block_until_ready((out_t, u_emb, v_emb))
    assert u_emb.shape == (batch, embedding_k)
    assert v_emb.shape == (batch, embedding_k)
    assert jnp.allclose(out_t, ref, atol=1e-5), "training output mismatch"
    assert jnp.allclose(u_emb, W[user_ids], atol=1e-5), "U_emb mismatch"
    assert jnp.allclose(v_emb, H[item_ids], atol=1e-5), "V_emb mismatch"

    print("KERNEL_OK")
</pallas_src>

<mosaic_0001>
module attributes {stable_mosaic.version = 11 : i64} {
  func.func @_mf_infer_kernel(%arg0: i32, %arg1: memref<1x128xi32, #tpu.memory_space<vmem>>, %arg2: memref<1x128xi32, #tpu.memory_space<vmem>>, %arg3: memref<4x32xf32, #tpu.memory_space<vmem>>, %arg4: memref<4x48xf32, #tpu.memory_space<vmem>>, %arg5: memref<1x128xf32, #tpu.memory_space<vmem>>) attributes {dimension_semantics = [#tpu.dimension_semantics<parallel>], iteration_bounds = array<i64: 1>, scalar_prefetch = 0 : i64, scratch_operands = 0 : i64, tpu.core_type = #tpu.core_type<tc>, window_params = [{transform_indices = @transform_0, window_bounds = array<i64: 1, 128>}, {transform_indices = @transform_1, window_bounds = array<i64: 1, 128>}, {pipeline_mode = #tpu.pipeline_mode<synchronous>, transform_indices = @transform_2, window_bounds = array<i64: 4, 32>}, {pipeline_mode = #tpu.pipeline_mode<synchronous>, transform_indices = @transform_3, window_bounds = array<i64: 4, 48>}, {transform_indices = @transform_4, window_bounds = array<i64: 1, 128>}]} {
    %c0 = arith.constant 0 : index
    %c0_0 = arith.constant 0 : index
    %0 = vector.load %arg1[%c0, %c0_0] : memref<1x128xi32, #tpu.memory_space<vmem>>, vector<1x128xi32>
    %c0_1 = arith.constant 0 : index
    %c0_2 = arith.constant 0 : index
    %1 = vector.load %arg2[%c0_1, %c0_2] : memref<1x128xi32, #tpu.memory_space<vmem>>, vector<1x128xi32>
    %2 = tpu.iota {dimensions = array<i32: 0>} : vector<32x128xi32>
    %3 = vector.broadcast %0 : vector<1x128xi32> to vector<32x128xi32>
    %4 = arith.cmpi eq, %2, %3 : vector<32x128xi32>
    %5 = arith.extui %4 : vector<32x128xi1> to vector<32x128xi32>
    %6 = arith.sitofp %5 : vector<32x128xi32> to vector<32x128xf32>
    %7 = tpu.iota {dimensions = array<i32: 0>} : vector<48x128xi32>
    %8 = vector.broadcast %1 : vector<1x128xi32> to vector<48x128xi32>
    %9 = arith.cmpi eq, %7, %8 : vector<48x128xi32>
    %10 = arith.extui %9 : vector<48x128xi1> to vector<48x128xi32>
    %11 = arith.sitofp %10 : vector<48x128xi32> to vector<48x128xf32>
    %c0_3 = arith.constant 0 : index
    %c0_4 = arith.constant 0 : index
    %12 = vector.load %arg3[%c0_3, %c0_4] : memref<4x32xf32, #tpu.memory_space<vmem>>, vector<4x32xf32>
    %cst = arith.constant dense<0.000000e+00> : vector<4x128xf32>
    %13 = tpu.matmul %12, %6, %cst {dimension_numbers = #tpu.dot_dimension_numbers<[1], [0], [0], [1], [0, 0, 1, 1], [], []>} : vector<4x32xf32>, vector<32x128xf32>, vector<4x128xf32> -> vector<4x128xf32>
    %c0_5 = arith.constant 0 : index
    %c0_6 = arith.constant 0 : index
    %14 = vector.load %arg4[%c0_5, %c0_6] : memref<4x48xf32, #tpu.memory_space<vmem>>, vector<4x48xf32>
    %cst_7 = arith.constant dense<0.000000e+00> : vector<4x128xf32>
    %15 = tpu.matmul %14, %11, %cst_7 {dimension_numbers = #tpu.dot_dimension_numbers<[1], [0], [0], [1], [0, 0, 1, 1], [], []>} : vector<4x48xf32>, vector<48x128xf32>, vector<4x128xf32> -> vector<4x128xf32>
    %16 = arith.mulf %13, %15 : vector<4x128xf32>
    %cst_8 = arith.constant dense<0.000000e+00> : vector<128xf32>
    %17 = vector.multi_reduction <add>, %16, %cst_8 [0] : vector<4x128xf32> to vector<128xf32>
    %18 = vector.shape_cast %17 : vector<128xf32> to vector<1x128xf32>
    %c0_9 = arith.constant 0 : index
    %c0_10 = arith.constant 0 : index
    %19 = vector.load %arg5[%c0_9, %c0_10] : memref<1x128xf32, #tpu.memory_space<vmem>>, vector<1x128xf32>
    tpu.vector_store %arg5[%c0_9, %c0_10], %18 {strides = array<i32>} : memref<1x128xf32, #tpu.memory_space<vmem>>, vector<1x128xf32>,
    return
  }
  func.func @transform_0(%arg0: i32) -> (i32, i32) {
    %c0_i32 = arith.constant 0 : i32
    %c0_i32_0 = arith.constant 0 : i32
    return %c0_i32, %arg0 : i32, i32
  }
  func.func @transform_1(%arg0: i32) -> (i32, i32) {
    %c0_i32 = arith.constant 0 : i32
    %c0_i32_0 = arith.constant 0 : i32
    return %c0_i32, %arg0 : i32, i32
  }
  func.func @transform_2(%arg0: i32) -> (i32, i32) {
    %c0_i32 = arith.constant 0 : i32
    %c0_i32_0 = arith.constant 0 : i32
    %c0_i32_1 = arith.constant 0 : i32
    return %c0_i32, %c0_i32_0 : i32, i32
  }
  func.func @transform_3(%arg0: i32) -> (i32, i32) {
    %c0_i32 = arith.constant 0 : i32
    %c0_i32_0 = arith.constant 0 : i32
    %c0_i32_1 = arith.constant 0 : i32
    return %c0_i32, %c0_i32_0 : i32, i32
  }
  func.func @transform_4(%arg0: i32) -> (i32, i32) {
    %c0_i32 = arith.constant 0 : i32
    %c0_i32_0 = arith.constant 0 : i32
    return %c0_i32, %arg0 : i32, i32
  }
}

</mosaic_0001>

<bundles_post_ra>
// kernel: tpu_custom_call.1
= control target key start
LH: loop header
LB: loop body
LE: loop exit
PB: predicated region body
PF: predicated region fallthrough
CT: control target
= control target key end

     0   :  { %9 = vsyncpa [#allocation3], 0  ;;  %s447_s0 = inlined_call_operand.hbm [shape: s32[1,128], index: 0, kind: input, shape index: {}]   ;;  %s448_s1 = inlined_call_operand.vmem [shape: s32[1,128], index: 1, kind: input, shape index: {}]   ;;  %s449_s2 = inlined_call_operand.vmem [shape: f32[4,32], index: 2, kind: input, shape index: {}]   ;;  %s450_s3 = inlined_call_operand.vmem [shape: f32[4,48], index: 3, kind: input, shape index: {}]   ;;  %s451_s4 = inlined_call_operand.hbm [shape: f32[1,128], index: 4, kind: output, shape index: {}]  }
   0x1   :  { %10 = vsyncpa [#allocation4], 0  ;;  %s383_s15 = smov [#allocation2]   ;;  %s335_s19 = scalar_lea.hbm %s447_s0, 16 }
   0x2   :  { %s17_s16 = sshll.u32 %s383_s15, 4  ;;  %p336_p0 = scmp.ne.s32.totalorder %s447_s0, %s335_s19  ;;  %s18_s16 = int_to_ptr.vmem [resolvable:$true] %s17_s16 }
   0x3   :  { %p339_p1 = scmp.lt.u32.totalorder %s335_s19, %s447_s0 }
   0x5   :  { %p341_p2 = pnand %p339_p1, %p336_p0 }
   0x7   :  { %344 = shalt.err (!%p341_p2)
}
   0x8   :  { %s345_s24 = scalar_lea.vmem %s18_s16, 16  ;;  %s349_s25 = scalar_lea.vmem %s18_s16, 32 }
   0x9   :  { %p346_p3 = scmp.ne.s32.totalorder %s18_s16, %s345_s24  ;;  %p350_p4 = scmp.lt.s32.totalorder %s18_s16, %s18_s16 }
   0xa   :  { %p351_p5 = scmp.lt.s32.totalorder %s349_s25, %s345_s24 }
   0xc   :  { %p352_p6 = por %p351_p5, %p350_p4 }
   0xe   :  { %p353_p7 = pnand %p352_p6, %p346_p3 }
  0x10   :  { %356 = shalt.err (!%p353_p7)
}
  0x11   :  { %20 = dma.hbm_to_vmem [thread:$0]  %s447_s0, 16, %s18_s16, [#allocation3]  }
  0x12   :  { %379 = dma.done.wait [#allocation3], 16  }
  0x13   :  { %380 = vsyncadd [#allocation3], 4294967280  ;;  %v32_v0 = vlaneseq  ;;  %v384_v1 = vmov 0.0|0.0   ;;  %vm385_vm0 = vmmov 0   ;;  %v386_v3 = vmov 0.0  }
  0x14   :  { %320 = vmatprep.subr.bf16.mxu1 %v384_v1  ;;  %314 = vmatprep.subr.bf16.mxu0 %v384_v1  ;;  %v257_v7 = vld [vmem:[%s448_s1] ss:$0 sm:$0xff]  ;;  %v252_v8 = vld [vmem:[#allocation2] ss:$0 sm:$0xff]  ;;  %v387_v11 = vmov 1.0|1.0  }
  0x15   :  { %v33_v2 = vshrl.u32 %v32_v0, 7  ;;  %296 = vmatprep.mubr.msk.f32.mxu0 %vm385_vm0, %v386_v3  ;;  %311 = vmatprep.mubr.msk.f32.mxu1 %vm385_vm0, %v386_v3  ;;  %v77_v12 = vld [vmem:[%s449_s2] sm:$0xf]  ;;  %vm78_vm0 = vcmask 261120   ;;  %s388_s2 = smov [#allocation5]  }
  0x16   :  { %v152_v13 = vld [vmem:[%s450_s3] sm:$0xf]  ;;  %s243_s6 = sshll.u32 %s388_s2, 4  ;;  %s244_s6 = int_to_ptr.vmem [resolvable:$true] %s243_s6 }
  0x17   :  { %v34_v4 = vadd.s32 8, %v33_v2  ;;  %v35_v5 = vadd.s32 16, %v33_v2  ;;  %v36_v6 = vadd.s32 24, %v33_v2  ;;  %v53_v9 = vadd.s32 32, %v33_v2  ;;  %s357_s3 = scalar_lea.vmem %s244_s6, 16  ;;  %s361_s7 = scalar_lea.vmem %s244_s6, 32 }
  0x18   :  { %v54_v10 = vadd.s32 40, %v33_v2  ;;  %vm59_vm1 = vcmp.eq.s32.totalorder %v33_v2, %v257_v7  ;;  %vm41_vm3 = vcmp.eq.s32.totalorder %v33_v2, %v252_v8  ;;  %p358_p8 = scmp.ne.s32.totalorder %s244_s6, %s357_s3  ;;  %p362_p9 = scmp.lt.s32.totalorder %s244_s6, %s244_s6 }
  0x19   :  { %vm60_vm2 = vcmp.eq.s32.totalorder %v34_v4, %v257_v7  ;;  %vm42_vm4 = vcmp.eq.s32.totalorder %v34_v4, %v252_v8  ;;  %vm61_vm6 = vcmp.eq.s32.totalorder %v35_v5, %v257_v7  ;;  %vm62_vm7 = vcmp.eq.s32.totalorder %v36_v6, %v257_v7  ;;  %p363_p10 = scmp.lt.s32.totalorder %s361_s7, %s357_s3 }
  0x1a   :  { %vm321_vm5 = vmpackc.low %vm60_vm2, %vm59_vm1  ;;  %vm43_vm8 = vcmp.eq.s32.totalorder %v35_v5, %v252_v8  ;;  %vm44_vm9 = vcmp.eq.s32.totalorder %v36_v6, %v252_v8  ;;  %vm63_vm13 = vcmp.eq.s32.totalorder %v53_v9, %v257_v7  ;;  %vm64_vm14 = vcmp.eq.s32.totalorder %v54_v10, %v257_v7 }
  0x1b   :  { %322 = vmatpush3.bf16.msk.msra.mxu1 %vm321_vm5, %v387_v11  ;;  %vm315_vm10 = vmpackc.low %vm42_vm4, %vm41_vm3  ;;  %vm153_vm1 = vcmask 392192   ;;  %vm228_vm2 = vcmask 1043456   ;;  %p364_p11 = por %p363_p10, %p362_p9 }
  0x1c   :  { %316 = vmatpush3.bf16.msk.msra.mxu0 %vm315_vm10, %v387_v11  ;;  %323 = vmatprep.subr.bf16.mxu1 %v384_v1  ;;  %vm324_vm11 = vmpackc.low %vm62_vm7, %vm61_vm6 }
  0x1d   :  { %317 = vmatprep.subr.bf16.mxu0 %v384_v1  ;;  %vm318_vm12 = vmpackc.low %vm44_vm9, %vm43_vm8  ;;  %p365_p12 = pnand %p364_p11, %p358_p8 }
  0x1e   :  { %vm327_vm15 = vmpackc.low %vm64_vm14, %vm63_vm13 }
  0x1f   :  { %325 = vmatpush3.bf16.msk.msra.mxu1 %vm324_vm11, %v387_v11 }
  0x20   :  { %319 = vmatpush3.bf16.msk.msra.mxu0 %vm318_vm12, %v387_v11  ;;  %326 = vmatprep.subr.bf16.mxu1 %v384_v1 }
  0x23   :  { %328 = vmatpush3.bf16.msk.msra.mxu1 %vm327_vm15, %v387_v11  ;;  %297 = vmatmul.mubr.msk.f32.vlgmr.msra.gmra.mrb[0].mxu0 %vm78_vm0, %v77_v12 }
  0x26   :  { %312 = vmatmul.mubr.msk.f32.vlgmr.msra.gmra.mrb[0].mxu1 %vm153_vm1, %v152_v13 }
  0xf6   :  { %v148_v14 = vpop.f32.mrb[0].mxu0 }
  0xf7   :  { %v298_v15 = vpop.f32.mrb[1].mxu0 }
  0xf9   :  { %v223_v16 = vpop.f32.mrb[0].mxu1 }
  0xfa   :  { %v227_v17 = vmul.f32 %v223_v16, %v148_v14  ;;  %v313_v18 = vpop.f32.mrb[1].mxu1 }
  0xfc   :  { %v229_v19 = vsel %vm228_vm2, %v227_v17, 0.0 }
  0xfd   :  { %v230_v20 = vrot.slane %v229_v19, 4 }
  0xff   :  { %v231_v21 = vadd.f32 %v230_v20, %v229_v19 }
 0x101   :  { %v232_v22 = vrot.slane %v231_v21, 2 }
 0x103   :  { %v233_v23 = vadd.f32 %v232_v22, %v231_v21 }
 0x105   :  { %v234_v24 = vrot.slane %v233_v23, 1 }
 0x107   :  { %v235_v25 = vadd.f32 %v234_v24, %v233_v23 }
 0x109   :  { %236 = vst [vmem:[#allocation5] sm:$0x1] %v235_v25 }
 0x10a   :  { %368 = shalt.err (!%p365_p12)
}
 0x10b   :  { %s369_s10 = scalar_lea.hbm %s451_s4, 16 }
 0x10c   :  { %p370_p13 = scmp.ne.s32.totalorder %s451_s4, %s369_s10  ;;  %p373_p0 = scmp.lt.u32.totalorder %s369_s10, %s451_s4 }
 0x10e   :  { %p375_p1 = pnand %p373_p0, %p370_p13 }
 0x110   :  { %378 = shalt.err (!%p375_p1)
}
 0x111   :  { %246 = dma.vmem_to_hbm [thread:$0]  %s244_s6, 16, %s451_s4, [#allocation4]  }
 0x112   :  { %381 = dma.done.wait [#allocation4], 16  }
 0x113   :  { %382 = vsyncadd [#allocation4], 4294967280 }
 0x114   :  { %250 = vsyncpa [#allocation3], 1 }
 0x115   :  { %251 = vsyncpa [#allocation4], 1 }

</bundles_post_ra>
